<compile_context>
chip_gen: v7x
topology: tpu7x:2x2x1
jax: 0.10.0
libtpu: 0.0.40
codegen_flags: <defaults>
</compile_context>

<pallas_src>
import jax
import jax.numpy as jnp
from jax.experimental import pallas as pl
from jax.experimental.pallas import tpu as pltpu


def _condition_kernel(ts_ref, wc_ref, bc_ref, out_ref):
    """Fused lead-time-conditioning kernel.

    ts_ref : SMEM int32[1]        -- scalar-prefetch timestep (consumed by the
                                     index_map; selects which table row is DMA'd)
    wc_ref : VMEM [1, 1, 2*blocks] -- the selected row of the fused table W1@W2
    bc_ref : VMEM [1, 2*blocks]    -- fused bias b1@W2 + b2
    out_ref: VMEM [1, 2*blocks]    -- batch-invariant output row
    """
    del ts_ref  # only used by the index_maps
    row = wc_ref[0].astype(jnp.float32) + bc_ref[...].astype(jnp.float32)
    out_ref[...] = row.astype(out_ref.dtype)


def prepare_fused_params(params, dtype=jnp.float32):
    """One-time parameter preparation (outside the per-call hot path).

    params: w1 (F, H), b1 (H,), w2 (H, 2*blocks), b2 (2*blocks,)
            with weights stored as (in_features, out_features).
    Returns the fused lead-time table and bias, pre-cast and pre-shaped.
    """
    w1 = params["w1"].astype(jnp.float32)
    b1 = params["b1"].astype(jnp.float32)
    w2 = params["w2"].astype(jnp.float32)
    b2 = params["b2"].astype(jnp.float32)
    wc = (w1 @ w2).astype(dtype)              # (F, 2*blocks)
    bc = (b1 @ w2 + b2).astype(dtype)         # (2*blocks,)
    f, n = wc.shape
    # (F, 1, N): keeps the last two block dims equal to the full array dims so
    # the per-row gather block (1, 1, N) is always layout-legal.
    return {"wc": wc.reshape(f, 1, n), "bc": bc.reshape(1, n)}


def condition_with_time_metnet2(x, timestep, fused, forecast_steps, total_blocks):
    """JAX wrapper reproducing ConditionWithTimeMetNet2.forward.

    Args:
      x: array whose leading dim is the batch (only batch size / dtype matter).
      timestep: python int or (traced) int scalar.
      fused: output of prepare_fused_params.
    Returns:
      (B, total_blocks, 2) array.
    """
    B = x.shape[0]
    dtype = x.dtype
    N = total_blocks * 2

    if isinstance(timestep, int):
        # PyTorch indexing would raise on an out-of-range timestep.
        assert 0 <= timestep < forecast_steps, "timestep out of range"
    # Clamp so a traced out-of-range timestep cannot cause an OOB table read.
    ts = jnp.clip(jnp.asarray(timestep, jnp.int32), 0, forecast_steps - 1).reshape(1)

    row = pl.pallas_call(
        _condition_kernel,
        out_shape=jax.ShapeDtypeStruct((1, N), dtype),
        grid_spec=pltpu.PrefetchScalarGridSpec(
            num_scalar_prefetch=1,
            grid=(1,),
            in_specs=[
                # DMA only the selected lead-time row of the fused table.
                pl.BlockSpec((1, 1, N), lambda i, ts: (ts[0], 0, 0)),
                pl.BlockSpec((1, N), lambda i, ts: (0, 0)),
            ],
            out_specs=pl.BlockSpec((1, N), lambda i, ts: (0, 0)),
        ),
    )(ts, fused["wc"], fused["bc"])

    # Batch broadcast + 'b (block sb) -> b block sb' rearrange stay in the
    # wrapper so XLA fuses them into whatever consumes the scales/biases.
    return jnp.broadcast_to(row, (B, N)).reshape(B, total_blocks, 2)


def init_params(key, forecast_steps, hidden_dim, total_blocks, dtype=jnp.float32):
    """Deterministic synthetic init matching nn.Linear shapes.

    PyTorch Linear stores W as (out, in); we store it transposed (in, out)."""
    k1, k2, k3, k4 = jax.random.split(key, 4)
    s1 = 1.0 / jnp.sqrt(forecast_steps)
    s2 = 1.0 / jnp.sqrt(hidden_dim)
    return {
        "w1": jax.random.uniform(k1, (forecast_steps, hidden_dim), dtype, -s1, s1),
        "b1": jax.random.uniform(k2, (hidden_dim,), dtype, -s1, s1),
        "w2": jax.random.uniform(k3, (hidden_dim, total_blocks * 2), dtype, -s2, s2),
        "b2": jax.random.uniform(k4, (total_blocks * 2,), dtype, -s2, s2),
    }


def _reference(x, timestep, params, forecast_steps, total_blocks):
    """Pure-JAX reference mirroring the PyTorch module (onehot -> two Linears)."""
    B = x.shape[0]
    onehot = jnp.zeros((B, forecast_steps), dtype=x.dtype).at[:, timestep].set(1.0)
    h = onehot @ params["w1"] + params["b1"]
    o = h @ params["w2"] + params["b2"]
    return o.reshape(B, total_blocks, 2)


if __name__ == "__main__":
    # Small shapes consistent with the module's forward.
    B, C, HW = 2, 4, 16           # x: (Batch, Channels, H, W) -- only batch matters
    forecast_steps = 8
    hidden_dim = 32
    total_blocks = 4
    timestep = 3

    key = jax.random.PRNGKey(0)
    kx, kp = jax.random.split(key)
    x = jax.random.normal(kx, (B, C, HW, HW), dtype=jnp.float32)
    params = init_params(kp, forecast_steps, hidden_dim, total_blocks)
    fused = prepare_fused_params(params, dtype=x.dtype)   # one-time prep

    # 1) Python-int timestep.
    out = condition_with_time_metnet2(x, timestep, fused, forecast_steps, total_blocks)
    out = jax.block_until_ready(out)
    ref = _reference(x, timestep, params, forecast_steps, total_blocks)
    assert out.shape == (B, total_blocks, 2), out.shape
    assert jnp.allclose(out, ref, atol=1e-4, rtol=1e-4), "mismatch vs reference (int timestep)"

    # 2) Traced timestep under jit (scalar-prefetch path, clamped in-range).
    jitted = jax.jit(
        lambda xx, t: condition_with_time_metnet2(xx, t, fused, forecast_steps, total_blocks)
    )
    t_arr = jnp.asarray(5, dtype=jnp.int32)
    out_j = jax.block_until_ready(jitted(x, t_arr))
    ref_j = _reference(x, 5, params, forecast_steps, total_blocks)
    assert jnp.allclose(out_j, ref_j, atol=1e-4, rtol=1e-4), "mismatch vs reference (traced timestep)"

    print("KERNEL_OK")
</pallas_src>

<mosaic_0001>
module attributes {stable_mosaic.version = 11 : i64} {
  func.func @_condition_kernel(%arg0: i32, %arg1: memref<1xi32, #tpu.memory_space<smem>>, %arg2: memref<1x1x8xf32, #tpu.memory_space<vmem>>, %arg3: memref<1x8xf32, #tpu.memory_space<vmem>>, %arg4: memref<1x8xf32, #tpu.memory_space<vmem>>) attributes {dimension_semantics = [#tpu.dimension_semantics<arbitrary>], iteration_bounds = array<i64: 1>, scalar_prefetch = 1 : i64, scratch_operands = 0 : i64, tpu.core_type = #tpu.core_type<tc>, window_params = [{transform_indices = @transform_0, window_bounds = array<i64: 1, 1, 8>}, {pipeline_mode = #tpu.pipeline_mode<synchronous>, transform_indices = @transform_1, window_bounds = array<i64: 1, 8>}, {pipeline_mode = #tpu.pipeline_mode<synchronous>, transform_indices = @transform_2, window_bounds = array<i64: 1, 8>}]} {
    %c0 = arith.constant 0 : index
    %c0_0 = arith.constant 0 : index
    %c0_1 = arith.constant 0 : index
    %0 = vector.load %arg2[%c0, %c0_0, %c0_1] : memref<1x1x8xf32, #tpu.memory_space<vmem>>, vector<1x1x8xf32>
    %1 = vector.shape_cast %0 : vector<1x1x8xf32> to vector<1x8xf32>
    %c0_2 = arith.constant 0 : index
    %c0_3 = arith.constant 0 : index
    %2 = vector.load %arg3[%c0_2, %c0_3] : memref<1x8xf32, #tpu.memory_space<vmem>>, vector<1x8xf32>
    %3 = arith.addf %1, %2 : vector<1x8xf32>
    %c0_4 = arith.constant 0 : index
    %c0_5 = arith.constant 0 : index
    %4 = vector.load %arg4[%c0_4, %c0_5] : memref<1x8xf32, #tpu.memory_space<vmem>>, vector<1x8xf32>
    tpu.vector_store %arg4[%c0_4, %c0_5], %3 {strides = array<i32>} : memref<1x8xf32, #tpu.memory_space<vmem>>, vector<1x8xf32>,
    return
  }
  func.func @transform_0(%arg0: i32, %arg1: memref<1xi32, #tpu.memory_space<smem>>) -> (i32, i32, i32) {
    %c0 = arith.constant 0 : index
    %0 = memref.load %arg1[%c0] : memref<1xi32, #tpu.memory_space<smem>>
    %c0_i32 = arith.constant 0 : i32
    %c0_i32_0 = arith.constant 0 : i32
    %c0_i32_1 = arith.constant 0 : i32
    return %0, %c0_i32, %c0_i32_0 : i32, i32, i32
  }
  func.func @transform_1(%arg0: i32, %arg1: memref<1xi32, #tpu.memory_space<smem>>) -> (i32, i32) {
    %c0_i32 = arith.constant 0 : i32
    %c0_i32_0 = arith.constant 0 : i32
    %c0_i32_1 = arith.constant 0 : i32
    return %c0_i32, %c0_i32_0 : i32, i32
  }
  func.func @transform_2(%arg0: i32, %arg1: memref<1xi32, #tpu.memory_space<smem>>) -> (i32, i32) {
    %c0_i32 = arith.constant 0 : i32
    %c0_i32_0 = arith.constant 0 : i32
    %c0_i32_1 = arith.constant 0 : i32
    return %c0_i32, %c0_i32_0 : i32, i32
  }
}

</mosaic_0001>

<bundles_post_ra>
// kernel: tpu_custom_call.1
= control target key start
LH: loop header
LB: loop body
LE: loop exit
PB: predicated region body
PF: predicated region fallthrough
CT: control target
= control target key end

     0   :  { %9 = vsyncpa [#allocation5], 0  ;;  %s154_s0 = inlined_call_operand.<no memory space> [shape: s32[1], index: 0, kind: input, shape index: {}]   ;;  %s155_s1 = inlined_call_operand.hbm [shape: f32[8,1,8], index: 1, kind: input, shape index: {}]   ;;  %s156_s2 = inlined_call_operand.vmem [shape: f32[1,8], index: 2, kind: input, shape index: {}]   ;;  %s157_s3 = inlined_call_operand.hbm [shape: f32[1,8], index: 3, kind: output, shape index: {}]  }
   0x1   :  { %10 = vsyncpa [#allocation6], 0  ;;  %s52_s14 = sshll.u32 %s154_s0, 4  ;;  %s105_s18 = smov [#allocation4]  }
   0x2   :  { %s18_s17 = scalar_lea.hbm %s155_s1, %s52_s14  ;;  %s20_s19 = sshll.u32 %s105_s18, 4  ;;  %s21_s19 = int_to_ptr.vmem [resolvable:$true] %s20_s19 }
   0x3   :  { %s55_s20 = scalar_lea.hbm %s18_s17, 16  ;;  %s57_s23 = scalar_lea.hbm %s155_s1, 128 }
   0x4   :  { %p56_p0 = scmp.ne.s32.totalorder %s18_s17, %s55_s20  ;;  %p58_p1 = scmp.lt.u32.totalorder %s18_s17, %s155_s1 }
   0x5   :  { %p59_p2 = scmp.lt.u32.totalorder %s57_s23, %s55_s20  ;;  %p61_p4 = scmp.lt.u32.totalorder %s55_s20, %s18_s17 }
   0x7   :  { %p60_p3 = por %p59_p2, %p58_p1 }
   0x9   :  { %p62_p5 = por %p61_p4, %p60_p3 }
   0xb   :  { %p63_p6 = pnand %p62_p5, %p56_p0 }
   0xd   :  { %66 = shalt.err (!%p63_p6)
}
   0xe   :  { %s67_s0 = scalar_lea.vmem %s21_s19, 16  ;;  %s71_s26 = scalar_lea.vmem %s21_s19, 32 }
   0xf   :  { %p68_p7 = scmp.ne.s32.totalorder %s21_s19, %s67_s0  ;;  %p72_p8 = scmp.lt.s32.totalorder %s21_s19, %s21_s19 }
  0x10   :  { %p73_p9 = scmp.lt.s32.totalorder %s71_s26, %s67_s0 }
  0x12   :  { %p74_p10 = por %p73_p9, %p72_p8 }
  0x14   :  { %p75_p11 = pnand %p74_p10, %p68_p7 }
  0x16   :  { %78 = shalt.err (!%p75_p11)
}
  0x17   :  { %23 = dma.hbm_to_vmem [thread:$0]  %s18_s17, 16, %s21_s19, [#allocation5]  }
  0x18   :  { %101 = dma.done.wait [#allocation5], 16  }
  0x19   :  { %102 = vsyncadd [#allocation5], 4294967280  ;;  %s106_s27 = smov [#allocation7]   ;;  %v30_v0 = vld [vmem:[#allocation4] sm:$0x1]  ;;  %vm33_vm0 = vcmask 57344  }
  0x1a   :  { %s41_s28 = sshll.u32 %s106_s27, 4  ;;  %v31_v1 = vld [vmem:[%s156_s2] sm:$0x1]  ;;  %s42_s28 = int_to_ptr.vmem [resolvable:$true] %s41_s28 }
  0x1b   :  { %v32_v2 = vadd.f32 %v31_v1, %v30_v0  ;;  %s79_s30 = scalar_lea.vmem %s42_s28, 16  ;;  %s83_s4 = scalar_lea.vmem %s42_s28, 32 }
  0x1c   :  { %p80_p12 = scmp.ne.s32.totalorder %s42_s28, %s79_s30  ;;  %p84_p13 = scmp.lt.s32.totalorder %s42_s28, %s42_s28 }
  0x1d   :  { %34 = vst.msk [vmem:[#allocation7] sm:$0x1] %vm33_vm0, %v32_v2  ;;  %p85_p0 = scmp.lt.s32.totalorder %s83_s4, %s79_s30 }
  0x1f   :  { %p86_p1 = por %p85_p0, %p84_p13 }
  0x21   :  { %p87_p2 = pnand %p86_p1, %p80_p12 }
  0x23   :  { %90 = shalt.err (!%p87_p2)
}
  0x24   :  { %s91_s7 = scalar_lea.hbm %s157_s3, 16 }
  0x25   :  { %p92_p3 = scmp.ne.s32.totalorder %s157_s3, %s91_s7  ;;  %p95_p4 = scmp.lt.u32.totalorder %s91_s7, %s157_s3 }
  0x27   :  { %p97_p5 = pnand %p95_p4, %p92_p3 }
  0x29   :  { %100 = shalt.err (!%p97_p5)
}
  0x2a   :  { %44 = dma.vmem_to_hbm [thread:$0]  %s42_s28, 16, %s157_s3, [#allocation6]  }
  0x2b   :  { %103 = dma.done.wait [#allocation6], 16  }
  0x2c   :  { %104 = vsyncadd [#allocation6], 4294967280 }
  0x2d   :  { %48 = vsyncpa [#allocation5], 1 }
  0x2e   :  { %49 = vsyncpa [#allocation6], 1 }

</bundles_post_ra>
